<compile_context>
chip_gen: v5e
topology: v5e:2x2
jax: 0.10.0
libtpu: 0.0.40
codegen_flags: <defaults>
</compile_context>

<pallas_src>
import jax
import jax.numpy as jnp
from jax import lax
from jax.experimental import pallas as pl
from jax.experimental.pallas import tpu as pltpu


def _round_up(x, m):
    return ((x + m - 1) // m) * m


def _hopfield_kernel(r_ref, y_ref, wqk_ref, ywv_ref, o_ref):
    r = r_ref[...]        # (TB, n)        matmul dtype (f32 or bf16)
    y = y_ref[...]        # (M, width)     matmul dtype
    wqk = wqk_ref[...]    # (n, width)     == (beta * Wq) @ Wk^T  (fused, wrapper)
    ywv = ywv_ref[...]    # (M, n_pad)     == Y @ Wv, zero-padded lane-dense

    cdt = r.dtype         # MXU operand dtype; accumulation always f32

    # q = (beta*R) @ Wq @ Wk^T  ->  (TB, width)   (single fused matmul)
    q = jnp.dot(r, wqk, preferred_element_type=jnp.float32).astype(cdt)

    # logits = q @ Y^T  ->  (TB, M); transpose expressed in the contraction,
    # not as a materialized .T (avoids XLU relayout).
    logits = lax.dot_general(
        q, y, (((1,), (1,)), ((), ())), preferred_element_type=jnp.float32
    )

    # Numerically stable softmax (f32), normalization deferred to the output.
    m = jnp.max(logits, axis=-1, keepdims=True)
    e = jnp.exp(logits - m)                     # (TB, M), unnormalized probs
    s = jnp.sum(e, axis=-1, keepdims=True)      # (TB, 1)

    # Unnormalized value readout against the pre-fused table: (TB, n_pad).
    z = jnp.dot(e.astype(cdt), ywv, preferred_element_type=jnp.float32)

    # EUP approximate reciprocal + one Newton step ~= full-precision 1/s,
    # applied once on the lane-dense output.
    inv = pl.reciprocal(s, approx=True)
    inv = inv * (2.0 - s * inv)
    o_ref[...] = (z * inv).astype(o_ref.dtype)


def hopfield_forward(R, Y, Wq, Wk, Wv, beta=0.1, matmul_dtype=jnp.float32):
    B, n = R.shape
    M, width = Y.shape
    n_pad = _round_up(n, 128)

    # --- wrapper-side precompute (f32), data-independent of the batch -------
    # Fused query projection with beta folded in: (n, n) @ (n, width).
    w_qk = jnp.dot(beta * Wq.astype(jnp.float32), Wk.astype(jnp.float32).T)
    # Pre-fused value readout Y @ Wv, padded lane-dense on the output dim.
    ywv = jnp.dot(Y.astype(jnp.float32), Wv.astype(jnp.float32))
    ywv_pad = jnp.pad(ywv, ((0, 0), (0, n_pad - n)))

    r_in = R.astype(matmul_dtype)
    y_in = Y.astype(matmul_dtype)
    wqk_in = w_qk.astype(matmul_dtype)
    ywv_in = ywv_pad.astype(matmul_dtype)

    # --- batch tiling: >=2 grid steps when possible (v7x 2-TC split), --------
    # capped for VMEM; tiny batches stay a single full-extent block.
    if B <= 8:
        TB = B
    else:
        TB = min(512, _round_up(pl.cdiv(B, 2), 8))
    grid = (pl.cdiv(B, TB),)

    # --- explicit scoped-VMEM budget sized from the actual buffers ----------
    op_bytes = jnp.dtype(matmul_dtype).itemsize
    resident = (M * width + n * width + M * n_pad) * op_bytes   # Y, Wqk, YWv
    per_step = TB * n * op_bytes + TB * n_pad * 4               # R tile, out tile
    scratch = TB * M * 4 * 4                                    # logits/e/etc. (f32)
    vmem_bytes = 2 * (resident + per_step) + scratch + (8 << 20)
    vmem_bytes = int(min(max(vmem_bytes, 32 << 20), 64 << 20))

    out = pl.pallas_call(
        _hopfield_kernel,
        out_shape=jax.ShapeDtypeStruct((B, n_pad), jnp.float32),
        grid=grid,
        in_specs=[
            pl.BlockSpec((TB, n), lambda i: (i, 0)),           # R tile
            pl.BlockSpec((M, width), lambda i: (0, 0)),        # Y      (resident)
            pl.BlockSpec((n, width), lambda i: (0, 0)),        # W_qk   (resident)
            pl.BlockSpec((M, n_pad), lambda i: (0, 0)),        # Y @ Wv (resident)
        ],
        out_specs=pl.BlockSpec((TB, n_pad), lambda i: (i, 0)),
        compiler_params=pltpu.CompilerParams(
            dimension_semantics=("parallel",),
            vmem_limit_bytes=vmem_bytes,
        ),
    )(r_in, y_in, wqk_in, ywv_in)

    return out[:, :n]


def init_hopfield_params(key, n, width):
    # Matches torch init scaling: rand(width,n)/(width*n)*1.0,
    # rand(width,n)/(width*n)*0.1, rand(n,n)/(n*n)*0.1 (uniform [0,1)).
    k1, k2, k3 = jax.random.split(key, 3)
    Wk = jax.random.uniform(k1, (width, n), jnp.float32) * (1.0 / (width * n)) * 1.0
    Wv = jax.random.uniform(k2, (width, n), jnp.float32) * (1.0 / (width * n)) * 0.1
    Wq = jax.random.uniform(k3, (n, n), jnp.float32) * (1.0 / (n * n)) * 0.1
    return Wq, Wk, Wv


def hopfield_reference(R, Y, Wq, Wk, Wv, beta=0.1):
    z0 = (beta * R) @ Wq
    z0 = z0 @ Wk.T
    z0 = z0 @ Y.T
    z0 = jax.nn.softmax(z0, axis=-1)
    z0 = z0 @ Y
    return z0 @ Wv


if __name__ == "__main__":
    n, width = 32, 16        # feature dims of the Hopfield module
    B, M = 8, 8              # batch of queries, number of stored patterns

    key = jax.random.PRNGKey(0)
    k_params, k_r, k_y = jax.random.split(key, 3)

    Wq, Wk, Wv = init_hopfield_params(k_params, n, width)
    R = jax.random.normal(k_r, (B, n), jnp.float32)
    Y = jax.random.normal(k_y, (M, width), jnp.float32)

    ref = hopfield_reference(R, Y, Wq, Wk, Wv, beta=0.1)

    # Default f32 path: strict check against the reference.
    out = jax.block_until_ready(hopfield_forward(R, Y, Wq, Wk, Wv, beta=0.1))
    assert out.shape == (B, n)
    assert jnp.allclose(out, ref, atol=1e-5, rtol=1e-5), "f32 mismatch vs reference"

    # bf16 MXU-operand path (perf mode): softmax/accumulation stay f32, so the
    # result only differs by bf16 operand rounding (looser tolerance).
    out_bf16 = jax.block_until_ready(
        hopfield_forward(R, Y, Wq, Wk, Wv, beta=0.1, matmul_dtype=jnp.bfloat16)
    )
    assert out_bf16.shape == (B, n)
    assert bool(jnp.all(jnp.isfinite(out_bf16)))
    assert jnp.allclose(out_bf16, ref, atol=1e-4), "bf16 path out of tolerance"

    print("KERNEL_OK")
</pallas_src>

<mosaic_0001>
module attributes {stable_mosaic.version = 11 : i64} {
  func.func @_hopfield_kernel(%arg0: i32, %arg1: memref<8x32xf32, #tpu.memory_space<vmem>>, %arg2: memref<8x16xf32, #tpu.memory_space<vmem>>, %arg3: memref<32x16xf32, #tpu.memory_space<vmem>>, %arg4: memref<8x128xf32, #tpu.memory_space<vmem>>, %arg5: memref<8x128xf32, #tpu.memory_space<vmem>>) attributes {dimension_semantics = [#tpu.dimension_semantics<parallel>], iteration_bounds = array<i64: 1>, scalar_prefetch = 0 : i64, scratch_operands = 0 : i64, tpu.core_type = #tpu.core_type<tc>, window_params = [{transform_indices = @transform_0, window_bounds = array<i64: 8, 32>}, {pipeline_mode = #tpu.pipeline_mode<synchronous>, transform_indices = @transform_1, window_bounds = array<i64: 8, 16>}, {pipeline_mode = #tpu.pipeline_mode<synchronous>, transform_indices = @transform_2, window_bounds = array<i64: 32, 16>}, {pipeline_mode = #tpu.pipeline_mode<synchronous>, transform_indices = @transform_3, window_bounds = array<i64: 8, 128>}, {transform_indices = @transform_4, window_bounds = array<i64: 8, 128>}]} {
    %c0 = arith.constant 0 : index
    %c0_0 = arith.constant 0 : index
    %0 = vector.load %arg1[%c0, %c0_0] : memref<8x32xf32, #tpu.memory_space<vmem>>, vector<8x32xf32>
    %c0_1 = arith.constant 0 : index
    %c0_2 = arith.constant 0 : index
    %1 = vector.load %arg2[%c0_1, %c0_2] : memref<8x16xf32, #tpu.memory_space<vmem>>, vector<8x16xf32>
    %c0_3 = arith.constant 0 : index
    %c0_4 = arith.constant 0 : index
    %2 = vector.load %arg3[%c0_3, %c0_4] : memref<32x16xf32, #tpu.memory_space<vmem>>, vector<32x16xf32>
    %c0_5 = arith.constant 0 : index
    %c0_6 = arith.constant 0 : index
    %3 = vector.load %arg4[%c0_5, %c0_6] : memref<8x128xf32, #tpu.memory_space<vmem>>, vector<8x128xf32>
    %cst = arith.constant dense<0.000000e+00> : vector<8x16xf32>
    %4 = tpu.matmul %0, %2, %cst {dimension_numbers = #tpu.dot_dimension_numbers<[1], [0], [0], [1], [0, 0, 1, 1], [], []>} : vector<8x32xf32>, vector<32x16xf32>, vector<8x16xf32> -> vector<8x16xf32>
    %cst_7 = arith.constant dense<0.000000e+00> : vector<8x8xf32>
    %5 = tpu.matmul %4, %1, %cst_7 {dimension_numbers = #tpu.dot_dimension_numbers<[1], [1], [0], [0], [0, 0, 1, 0], [], []>} : vector<8x16xf32>, vector<8x16xf32>, vector<8x8xf32> -> vector<8x8xf32>
    %cst_8 = arith.constant dense<0xFF800000> : vector<8xf32>
    %6 = vector.multi_reduction <maximumf>, %5, %cst_8 [1] : vector<8x8xf32> to vector<8xf32>
    %7 = vector.shape_cast %6 : vector<8xf32> to vector<8x1xf32>
    %8 = vector.broadcast %7 : vector<8x1xf32> to vector<8x8xf32>
    %9 = arith.subf %5, %8 : vector<8x8xf32>
    %10 = math.exp %9 : vector<8x8xf32>
    %cst_9 = arith.constant dense<0.000000e+00> : vector<8xf32>
    %11 = vector.multi_reduction <add>, %10, %cst_9 [1] : vector<8x8xf32> to vector<8xf32>
    %12 = vector.shape_cast %11 : vector<8xf32> to vector<8x1xf32>
    %cst_10 = arith.constant dense<0.000000e+00> : vector<8x128xf32>
    %13 = tpu.matmul %10, %3, %cst_10 {dimension_numbers = #tpu.dot_dimension_numbers<[1], [0], [0], [1], [0, 0, 1, 1], [], []>} : vector<8x8xf32>, vector<8x128xf32>, vector<8x128xf32> -> vector<8x128xf32>
    %14 = tpu.reciprocal %12 {approx = true} : vector<8x1xf32> -> vector<8x1xf32>
    %15 = arith.mulf %12, %14 : vector<8x1xf32>
    %cst_11 = arith.constant 2.000000e+00 : f32
    %16 = vector.broadcast %cst_11 : f32 to vector<8x1xf32>
    %17 = arith.subf %16, %15 : vector<8x1xf32>
    %18 = arith.mulf %14, %17 : vector<8x1xf32>
    %19 = vector.broadcast %18 : vector<8x1xf32> to vector<8x128xf32>
    %20 = arith.mulf %13, %19 : vector<8x128xf32>
    %c0_12 = arith.constant 0 : index
    %c0_13 = arith.constant 0 : index
    %21 = vector.load %arg5[%c0_12, %c0_13] : memref<8x128xf32, #tpu.memory_space<vmem>>, vector<8x128xf32>
    tpu.vector_store %arg5[%c0_12, %c0_13], %20 {strides = array<i32>} : memref<8x128xf32, #tpu.memory_space<vmem>>, vector<8x128xf32>,
    return
  }
  func.func @transform_0(%arg0: i32) -> (i32, i32) {
    %c0_i32 = arith.constant 0 : i32
    %c0_i32_0 = arith.constant 0 : i32
    return %arg0, %c0_i32 : i32, i32
  }
  func.func @transform_1(%arg0: i32) -> (i32, i32) {
    %c0_i32 = arith.constant 0 : i32
    %c0_i32_0 = arith.constant 0 : i32
    %c0_i32_1 = arith.constant 0 : i32
    return %c0_i32, %c0_i32_0 : i32, i32
  }
  func.func @transform_2(%arg0: i32) -> (i32, i32) {
    %c0_i32 = arith.constant 0 : i32
    %c0_i32_0 = arith.constant 0 : i32
    %c0_i32_1 = arith.constant 0 : i32
    return %c0_i32, %c0_i32_0 : i32, i32
  }
  func.func @transform_3(%arg0: i32) -> (i32, i32) {
    %c0_i32 = arith.constant 0 : i32
    %c0_i32_0 = arith.constant 0 : i32
    %c0_i32_1 = arith.constant 0 : i32
    return %c0_i32, %c0_i32_0 : i32, i32
  }
  func.func @transform_4(%arg0: i32) -> (i32, i32) {
    %c0_i32 = arith.constant 0 : i32
    %c0_i32_0 = arith.constant 0 : i32
    return %arg0, %c0_i32 : i32, i32
  }
}

</mosaic_0001>

<bundles_post_ra>
// kernel: tpu_custom_call.1
= control target key start
LH: loop header
LB: loop body
LE: loop exit
PB: predicated region body
PF: predicated region fallthrough
CT: control target
= control target key end

     0   :  { %vm49_vm0 = vcmask 130048   ;;  %s216_s0 = inlined_call_operand.vmem [shape: f32[8,32], index: 0, kind: input, shape index: {}]   ;;  %s217_s1 = inlined_call_operand.vmem [shape: f32[8,16], index: 1, kind: input, shape index: {}]   ;;  %s218_s2 = inlined_call_operand.vmem [shape: f32[32,16], index: 2, kind: input, shape index: {}]   ;;  %s219_s3 = inlined_call_operand.vmem [shape: f32[8,128], index: 3, kind: input, shape index: {}]   ;;  %s220_s4 = inlined_call_operand.hbm [shape: f32[8,128], index: 4, kind: output, shape index: {}]  }
   0x1   :  { %v23_v0 = vld [vmem:[%s218_s2 + $0x18] sm:$0xff]  ;;  %v22_v1 = vld [vmem:[%s218_s2 + $0x10] sm:$0xff]  ;;  %v19_v2 = vld [vmem:[%s217_s1] sm:$0xff] }
   0x2   :  { %41 = vmatpush.msra.mxu0 %v23_v0  ;;  %v21_v3 = vld [vmem:[%s218_s2 + $0x8] sm:$0xff]  ;;  %132 = vmatpush.xpose.msk.msra.mxu1 %vm49_vm0, %v19_v2 }
   0x3   :  { %9 = vsyncpa [#allocation3], 0  ;;  %v20_v4 = vld [vmem:[%s218_s2] sm:$0xff]  ;;  %vm25_vm1 = vcmask 261120   ;;  %vm76_vm2 = vcmask 64512  }
   0x4   :  { %42 = vmatpush.msra.mxu0 %v22_v1  ;;  %v18_v5 = vld [vmem:[%s216_s0] sm:$0xff]  ;;  %s166_s0 = smov [#allocation2]  }
   0x5   :  { %v24_v9 = vld [vmem:[%s219_s3] sm:$0xff]  ;;  %s120_s2 = sshll.u32 %s166_s0, 4  ;;  %s122_s3 = sshll.u32 %s220_s4, 4  ;;  %s121_s2 = int_to_ptr.vmem [resolvable:$true] %s120_s2  ;;  %s123_s3 = int_to_ptr.hbm [resolvable:$true] %s122_s3 }
   0x6   :  { %43 = vmatpush.msra.mxu0 %v21_v3  ;;  %104 = vmatpush.msra.mxu2 %v24_v9 }
   0x8   :  { %44 = vmatpush.msra.mxu0 %v20_v4 }
   0x9   :  { %131 = vmatmul.msk.f32.vlgmr.msra.gmra.mxu0 %vm25_vm1, %v18_v5 }
  0x86   :  { %v46_v6 = vpop.f32.mrf.mxu0 }
  0x87   :  { %133 = vmatmul.msk.f32.vlgmr.msra.gmra.mxu1 %vm49_vm0, %v46_v6 }
 0x104   :  { %v73_v7 = vpop.f32.mrf.mxu1 }
 0x105   :  { %v77_v8 = vsel %vm76_vm2, %v73_v7, -inf }
 0x106   :  { %78 = vmax.xlane.f32.xlu0 %v77_v8 }
 0x179   :  { %v79_v10 = vpop.xlane.xlu0 %78 }
 0x17a   :  { %v80_v11 = vsub.f32 %v73_v7, %v79_v10 }
 0x17c   :  { %v81_v12 = vmul.f32 1.442695, %v80_v11 }
 0x17e   :  { %136 = vpow2.f32 %v81_v12 }
 0x184   :  { %v137_v13 = vpop.eup %136 }
 0x185   :  { %134 = vmatmul.msk.f32.vlgmr.msra.gmra.mxu2 %vm76_vm2, %v137_v13  ;;  %v83_v14 = vsel %vm76_vm2, %v137_v13, 0.0 }
 0x186   :  { %84 = vadd.xlane.f32.xlu0 %v83_v14 }
 0x1f9   :  { %v85_v15 = vpop.xlane.xlu0 %84 }
 0x1fa   :  { %138 = vrcp.f32 %v85_v15 }
 0x200   :  { %v139_v16 = vpop.eup %138 }
 0x201   :  { %v110_v17 = vmul.f32 %v139_v16, %v85_v15 }
 0x203   :  { %v111_v18 = vsub.f32 2.0, %v110_v17 }
 0x205   :  { %v112_v19 = vmul.f32 %v139_v16, %v111_v18 }
 0x208   :  { %v106_v20 = vpop.f32.mrf.mxu2 }
 0x209   :  { %v113_v21 = vmul.f32 %v112_v19, %v106_v20 }
 0x20b   :  { %114 = vst [vmem:[#allocation2] sm:$0xff] %v113_v21 }
 0x20c   :  { %125 = dma.vmem_to_hbm [thread:$0]  %s121_s2, 128, %s123_s3, [#allocation3]  }
 0x20d   :  { %164 = dma.done.wait [#allocation3], 128  }
 0x20e   :  { %165 = vsyncadd [#allocation3], 4294967168 }
 0x20f   :  { %130 = vsyncpa [#allocation3], 1 }

</bundles_post_ra>
